<compile_context>
chip_gen: v7x
topology: tpu7x:2x2x1
jax: 0.10.0
libtpu: 0.0.40
codegen_flags: <defaults>
</compile_context>

<pallas_src>
import jax
import jax.numpy as jnp
from jax.experimental import pallas as pl
from jax.experimental.pallas import tpu as pltpu


# --------------------------------------------------------------------------
# Kernel
# --------------------------------------------------------------------------
def _make_kernel(activation, n_ref_rows):
    """out[i, j*H + h] = act(bulk[i, h] * ref[j, h]) for one bulk-row tile."""

    def kernel(bulk_ref, ref_ref, out_ref):
        b = bulk_ref[...]                       # (tb, H)
        r = ref_ref[...]                        # (1, R*H)  flattened reference
        # Lane-dense replication of each bulk row across the R reference rows:
        # b_wide[i, j*H + h] == b[i, h]   (static unroll; R known at trace time)
        if n_ref_rows > 1:
            b_wide = jnp.concatenate([b] * n_ref_rows, axis=-1)   # (tb, R*H)
        else:
            b_wide = b
        expr = b_wide * r                       # r broadcasts over sublanes
        if activation == "relu":
            expr = jnp.maximum(expr, 0.0)
        elif activation == "tanh":
            expr = jnp.tanh(expr)
        out_ref[...] = expr.astype(out_ref.dtype)

    return kernel


# --------------------------------------------------------------------------
# Tiling / VMEM sizing helpers
# --------------------------------------------------------------------------
def _round_up(x, m):
    return -(-x // m) * m


def _choose_tiling(n_bulk, n_ref, n_hidden, out_itemsize,
                   target_tile_bytes=2 << 20):
    """Return (tb, padded_B).

    tb is a multiple of 8 dividing padded_B, sized so the output tile
    (tb * R * H * itemsize) is ~target_tile_bytes, preferring >= 2 grid steps
    so the 'parallel' axis can shard across both v7x TensorCores.
    """
    row_bytes = max(1, n_ref * n_hidden * out_itemsize)
    tb_cap = max(8, (target_tile_bytes // row_bytes) // 8 * 8)
    b_pad = _round_up(max(n_bulk, 1), 8)
    hi = min(b_pad, tb_cap)
    divisors = [d for d in range(8, hi + 1, 8) if b_pad % d == 0]
    if not divisors:
        divisors = [8]
    multi_step = [d for d in divisors if b_pad // d >= 2]
    tb = max(multi_step) if multi_step else max(divisors)
    return tb, b_pad


def _vmem_limit_bytes(tb, n_ref, n_hidden, in_itemsize, out_itemsize):
    # Double-buffered blocks + full-block intermediates that Mosaic may
    # materialize in VMEM.  Head-room x1.5 + 2 MiB, clamped to a range that is
    # safe on v5e/v6e (128 MiB) and v7x (64 MiB) VMEM.
    blocks = (2 * tb * n_hidden * in_itemsize            # bulk tile
              + 2 * n_ref * n_hidden * in_itemsize       # reference (resident)
              + 2 * tb * n_ref * n_hidden * out_itemsize)  # output tile
    interm = 2 * tb * n_ref * n_hidden * max(in_itemsize, 4)
    need = int((blocks + interm) * 1.5) + (2 << 20)
    return int(min(max(need, 16 << 20), 40 << 20))


# --------------------------------------------------------------------------
# Single (bulk, reference) pair
# --------------------------------------------------------------------------
def _dot_product_pair(bulk, reference, activation, out_dtype=None):
    B, H = bulk.shape
    R, Hr = reference.shape
    assert H == Hr, "hidden dims must match"
    out_dtype = bulk.dtype if out_dtype is None else jnp.dtype(out_dtype)

    out_itemsize = jnp.dtype(out_dtype).itemsize
    in_itemsize = jnp.dtype(bulk.dtype).itemsize
    tb, b_pad = _choose_tiling(B, R, H, out_itemsize)
    if b_pad != B:
        bulk = jnp.pad(bulk, ((0, b_pad - B), (0, 0)))

    ref_flat = reference.reshape(1, R * H)          # wrapper-side layout plumbing

    out2d = pl.pallas_call(
        _make_kernel(activation, R),
        out_shape=jax.ShapeDtypeStruct((b_pad, R * H), out_dtype),
        grid=(b_pad // tb,),
        in_specs=[
            pl.BlockSpec((tb, H), lambda i: (i, 0)),        # bulk tile
            pl.BlockSpec((1, R * H), lambda i: (0, 0)),     # flattened reference
        ],
        out_specs=pl.BlockSpec((tb, R * H), lambda i: (i, 0)),   # lane-dense
        compiler_params=pltpu.CompilerParams(
            dimension_semantics=("parallel",),
            vmem_limit_bytes=_vmem_limit_bytes(tb, R, H, in_itemsize, out_itemsize),
        ),
    )(bulk, ref_flat)

    if b_pad != B:
        out2d = out2d[:B]
    # torch: expr.reshape(-1, n_hidden) — same row-major (bulk_row, ref_row) order
    return out2d.reshape(-1, H)


# --------------------------------------------------------------------------
# Stacked list path (all pairs share shapes): one pallas_call, leading grid axis
# --------------------------------------------------------------------------
def _dot_product_stacked(bulk, reference, activation, out_dtype=None):
    P, B, H = bulk.shape
    _, R, _ = reference.shape
    out_dtype = bulk.dtype if out_dtype is None else jnp.dtype(out_dtype)

    out_itemsize = jnp.dtype(out_dtype).itemsize
    in_itemsize = jnp.dtype(bulk.dtype).itemsize
    tb, b_pad = _choose_tiling(B, R, H, out_itemsize)
    if b_pad != B:
        bulk = jnp.pad(bulk, ((0, 0), (0, b_pad - B), (0, 0)))

    ref_flat = reference.reshape(P, 1, R * H)

    out = pl.pallas_call(
        _make_kernel(activation, R),
        out_shape=jax.ShapeDtypeStruct((P, b_pad, R * H), out_dtype),
        grid=(P, b_pad // tb),
        in_specs=[
            pl.BlockSpec((None, tb, H), lambda p, i: (p, i, 0)),
            pl.BlockSpec((None, 1, R * H), lambda p, i: (p, 0, 0)),
        ],
        out_specs=pl.BlockSpec((None, tb, R * H), lambda p, i: (p, i, 0)),
        compiler_params=pltpu.CompilerParams(
            dimension_semantics=("parallel", "parallel"),
            vmem_limit_bytes=_vmem_limit_bytes(tb, R, H, in_itemsize, out_itemsize),
        ),
    )(bulk, ref_flat)

    if b_pad != B:
        out = out[:, :B]
    return [out[p].reshape(-1, H) for p in range(P)]


# --------------------------------------------------------------------------
# Public API: JAX/Pallas equivalent of DotProductor.forward
# --------------------------------------------------------------------------
def dot_productor(bulk, reference, *, activation=None, use_deepest=False,
                  out_dtype=None):
    assert activation in ("relu", "tanh", None)
    if use_deepest:
        return _dot_product_pair(bulk, reference, activation, out_dtype)

    bulks, refs = list(bulk), list(reference)
    same_shapes = (
        len(bulks) > 1
        and all(b.shape == bulks[0].shape and b.dtype == bulks[0].dtype for b in bulks)
        and all(r.shape == refs[0].shape and r.dtype == refs[0].dtype for r in refs)
    )
    if same_shapes:
        return _dot_product_stacked(jnp.stack(bulks), jnp.stack(refs),
                                    activation, out_dtype)
    return [_dot_product_pair(b, r, activation, out_dtype)
            for b, r in zip(bulks, refs)]


# --------------------------------------------------------------------------
# Pure-JAX reference (for correctness checks)
# --------------------------------------------------------------------------
def _reference_pair(bulk, reference, activation):
    expr = bulk[:, None, :] * reference[None, :, :]
    if activation == "relu":
        expr = jnp.maximum(expr, 0.0)
    elif activation == "tanh":
        expr = jnp.tanh(expr)
    return expr.reshape(-1, bulk.shape[1])


if __name__ == "__main__":
    key = jax.random.PRNGKey(0)
    k1, k2, k3, k4, k5, k6 = jax.random.split(key, 6)

    H, B, R = 32, 16, 8

    bulk = jax.random.normal(k1, (B, H), dtype=jnp.float32)
    reference = jax.random.normal(k2, (R, H), dtype=jnp.float32)

    # --- use_deepest=True path, all activations ---
    for act in (None, "relu", "tanh"):
        out = jax.block_until_ready(
            dot_productor(bulk, reference, activation=act, use_deepest=True))
        ref = _reference_pair(bulk, reference, act)
        assert out.shape == (B * R, H), out.shape
        assert jnp.allclose(out, ref, atol=1e-5, rtol=1e-5), f"mismatch act={act}"

    # --- bulk rows not a multiple of 8: exercises padding + trailing slice ---
    bulk_odd = jax.random.normal(k3, (10, H), dtype=jnp.float32)
    out = jax.block_until_ready(
        dot_productor(bulk_odd, reference, activation="tanh", use_deepest=True))
    assert jnp.allclose(out, _reference_pair(bulk_odd, reference, "tanh"),
                        atol=1e-5, rtol=1e-5)

    # --- use_deepest=False with identical shapes: single batched pallas_call ---
    bulk_list = [bulk, jax.random.normal(k4, (B, H), dtype=jnp.float32)]
    ref_list = [reference, jax.random.normal(k5, (R, H), dtype=jnp.float32)]
    outs = jax.block_until_ready(
        dot_productor(bulk_list, ref_list, activation="relu", use_deepest=False))
    for o, b, r in zip(outs, bulk_list, ref_list):
        e = _reference_pair(b, r, "relu")
        assert o.shape == e.shape
        assert jnp.allclose(o, e, atol=1e-5, rtol=1e-5)

    # --- use_deepest=False with mismatched shapes: per-pair fallback ---
    bulk_list2 = [bulk, jax.random.normal(k6, (8, H), dtype=jnp.float32)]
    ref_list2 = [reference, jax.random.normal(k5, (16, H), dtype=jnp.float32)]
    outs2 = jax.block_until_ready(
        dot_productor(bulk_list2, ref_list2, activation=None, use_deepest=False))
    for o, b, r in zip(outs2, bulk_list2, ref_list2):
        e = _reference_pair(b, r, None)
        assert o.shape == e.shape
        assert jnp.allclose(o, e, atol=1e-5, rtol=1e-5)

    print("KERNEL_OK")
</pallas_src>

<mosaic_0001>
module attributes {stable_mosaic.version = 11 : i64} {
  func.func @kernel(%arg0: i32, %arg1: memref<8x32xf32, #tpu.memory_space<vmem>>, %arg2: memref<1x256xf32, #tpu.memory_space<vmem>>, %arg3: memref<8x256xf32, #tpu.memory_space<vmem>>) attributes {dimension_semantics = [#tpu.dimension_semantics<parallel>], iteration_bounds = array<i64: 2>, scalar_prefetch = 0 : i64, scratch_operands = 0 : i64, tpu.core_type = #tpu.core_type<tc>, window_params = [{transform_indices = @transform_0, window_bounds = array<i64: 8, 32>}, {pipeline_mode = #tpu.pipeline_mode<synchronous>, transform_indices = @transform_1, window_bounds = array<i64: 1, 256>}, {transform_indices = @transform_2, window_bounds = array<i64: 8, 256>}]} {
    %c0 = arith.constant 0 : index
    %c0_0 = arith.constant 0 : index
    %0 = vector.load %arg1[%c0, %c0_0] : memref<8x32xf32, #tpu.memory_space<vmem>>, vector<8x32xf32>
    %c0_1 = arith.constant 0 : index
    %c0_2 = arith.constant 0 : index
    %1 = vector.load %arg2[%c0_1, %c0_2] : memref<1x256xf32, #tpu.memory_space<vmem>>, vector<1x256xf32>
    %2 = tpu.concatenate %0, %0, %0, %0, %0, %0, %0, %0 in 1 : vector<8x32xf32>, vector<8x32xf32>, vector<8x32xf32>, vector<8x32xf32>, vector<8x32xf32>, vector<8x32xf32>, vector<8x32xf32>, vector<8x32xf32> -> vector<8x256xf32>
    %3 = vector.broadcast %1 : vector<1x256xf32> to vector<8x256xf32>
    %4 = arith.mulf %2, %3 : vector<8x256xf32>
    %c0_3 = arith.constant 0 : index
    %c0_4 = arith.constant 0 : index
    %5 = vector.load %arg3[%c0_3, %c0_4] : memref<8x256xf32, #tpu.memory_space<vmem>>, vector<8x256xf32>
    tpu.vector_store %arg3[%c0_3, %c0_4], %4 {strides = array<i32>} : memref<8x256xf32, #tpu.memory_space<vmem>>, vector<8x256xf32>,
    return
  }
  func.func @transform_0(%arg0: i32) -> (i32, i32) {
    %c0_i32 = arith.constant 0 : i32
    %c0_i32_0 = arith.constant 0 : i32
    return %arg0, %c0_i32 : i32, i32
  }
  func.func @transform_1(%arg0: i32) -> (i32, i32) {
    %c0_i32 = arith.constant 0 : i32
    %c0_i32_0 = arith.constant 0 : i32
    %c0_i32_1 = arith.constant 0 : i32
    return %c0_i32, %c0_i32_0 : i32, i32
  }
  func.func @transform_2(%arg0: i32) -> (i32, i32) {
    %c0_i32 = arith.constant 0 : i32
    %c0_i32_0 = arith.constant 0 : i32
    return %arg0, %c0_i32 : i32, i32
  }
}

</mosaic_0001>

<bundles_post_ra>
// kernel: tpu_custom_call.1
= control target key start
LH: loop header
LB: loop body
LE: loop exit
PB: predicated region body
PF: predicated region fallthrough
CT: control target
= control target key end

     0   :  { %7 = vsyncpa [#allocation3], 0  ;;  %s623_s0 = inlined_call_operand.hbm [shape: f32[16,32], index: 0, kind: input, shape index: {}]   ;;  %s624_s1 = inlined_call_operand.vmem [shape: f32[1,256], index: 1, kind: input, shape index: {}]   ;;  %s625_s2 = inlined_call_operand.hbm [shape: f32[16,256], index: 2, kind: output, shape index: {}]  }
   0x1   :  { %9 = vsyncpa [#allocation3 + $0x1], 0 }
   0x2   :  { %10 = vsyncpa [#allocation4], 0 }
   0x3   :  { %12 = vsyncpa [#allocation4 + $0x1], 0  ;;  %s458_s9 = smov 0   ;;  %s460_s10 = smov 0  }
   0x4   :  { %s462_s11 = smov 0   ;;  %s464_s12 = smov 0  }
   0x5 LB: > { %s479_s13 = sadd.s32 4294967295, %s436_s12   ;;  %s277_s14 = sadd.s32 4294967294, %s436_s12   ;;  %s436_s12 = sphi %s464_s12, %s640_s12   ;;  %s432_s11 = sphi %s462_s11, %s639_s11   ;;  %s428_s10 = sphi %s460_s10, %s638_s10   ;;  %s424_s9 = sphi %s458_s9, %s637_s9  }
   0x6   : > { %s483_s15 = sadd.s32 1, %s436_s12   ;;  %s25_s16 = sadd.s32 1, %s432_s11 }
   0x7   : > { %s22_s17 = ssub.s32 %s436_s12, %s483_s15  ;;  %p32_p0 = scmp.ne.s32.totalorder %s432_s11, %s428_s10 }
   0x8   : > { %p23_p1 = scmp.eq.s32.totalorder %s22_s17, 0  ;;  %p33_p2 = scmp.eq.s32.totalorder %s436_s12, 0 }
   0x9   : > { %p38_p3 = scmp.ne.s32.totalorder %s428_s10, %s424_s9  ;;  %p39_p4 = scmp.eq.s32.totalorder %s479_s13, 0 }
   0xa   : > { %s495_s18 = scalar_select %p23_p1, %s432_s11, %s25_s16  }
   0xb   : > { %p497_p5 = por %p33_p2, %p32_p0  ;;  %p501_p6 = por %p39_p4, %p38_p3 }
   0xc   : > { %p83_p7 = scmp.eq.s32.totalorder %s479_s13, 1  ;;  %p89_p8 = scmp.eq.s32.totalorder %s277_s14, 1 }
   0xd   : > { %p303_p10 = scmp.lt.s32.totalorder %s436_s12, 2  ;;  %s112_s23 = sand.u32 1, %s432_s11  }
   0xe   : > { %p508_p11 = por %p83_p7, %p32_p0  ;;  %p512_p12 = por %p89_p8, %p38_p3 }
   0xf   : > { %s281_s24 = sshll.u32 %s436_s12, 7  ;;  %s280_s25 = sshll.u32 %s112_s23, 3 }
  0x10   : > { %s629_s21 = scalar_select %p508_p11, 1, 0 }
  0x11   : > { %s630_s22 = scalar_select %p512_p12, 1, 0 }
  0x12   : > { %s521_s28 = scalar_lea.hbm %s623_s0, %s281_s24  ;;  %s116_s29 = scalar_lea.vmem [#allocation2], %s280_s25 }
  0x13   : > { %s123_s30 = sshll.u32 %s116_s29, 4  ;;  %p525_p13 = pnand %p303_p10, %p497_p5  ;;  %s529_s30 = int_to_ptr.vmem [resolvable:$true] %s123_s30 }
  0x14   : > { %s113_s4 = scalar_lea.sflag [#allocation3], %s112_s23  ;;  %s340_s5 = scalar_lea.hbm %s521_s28, 128 }
  0x15   : > { %p341_p2 = scmp.ne.s32.totalorder %s521_s28, %s340_s5  ;;  %p342_p3 = pneg %p525_p13 }
  0x16   : > { %s345_s8 = scalar_lea.hbm %s623_s0, 256  ;;  %p346_p5 = scmp.lt.u32.totalorder %s521_s28, %s623_s0 }
  0x17   : > { %p343_p4 = pnand %p342_p3, %p341_p2  ;;  %p347_p8 = scmp.lt.u32.totalorder %s345_s8, %s340_s5 }
  0x18   : > { %p349_p9 = scmp.lt.u32.totalorder %s340_s5, %s521_s28 }
  0x19   : > { %p344_p7 = pneg %p343_p4  ;;  %p348_p10 = por %p347_p8, %p346_p5 }
  0x1b   : > { %p350_p0 = por %p349_p9, %p348_p10 }
  0x1d   : > { %p351_p1 = pnand %p350_p0, %p344_p7 }
  0x1f   : > { %354 = shalt.err (!%p351_p1)
}
  0x20   : > { %s355_s17 = scalar_lea.vmem %s529_s30, 128  ;;  %s438_s19 = smov [#allocation2]  }
  0x21   : > { %p356_p2 = scmp.ne.s32.totalorder %s529_s30, %s355_s17  ;;  %s360_s23 = sshll.u32 %s438_s19, 4  ;;  %s361_s23 = int_to_ptr.vmem [resolvable:$false] %s360_s23 }
  0x22   : > { %s362_s24 = scalar_lea.vmem %s361_s23, 256  ;;  %p363_p11 = scmp.lt.s32.totalorder %s529_s30, %s361_s23 }
  0x23   : > { %p358_p4 = pnand %p356_p2, %p342_p3  ;;  %p364_p5 = scmp.lt.s32.totalorder %s362_s24, %s355_s17 }
  0x25   : > { %p359_p12 = pneg %p358_p4  ;;  %p365_p8 = por %p364_p5, %p363_p11 }
  0x27   : > { %p366_p9 = pnand %p365_p8, %p359_p12 }
  0x29   : > { %369 = shalt.err (!%p366_p9)
}
  0x2a   : > { %298 = dma.hbm_to_vmem [thread:$0]  (!%p525_p13), %s521_s28, 128, %s529_s30, %s113_s4  }
  0x2b   : > { %p632_p0 = scmp.lt.s32.totalorder %s436_s12, 3  ;;  %p633_p1 = scmp.ge.s32.totalorder %s436_s12, 1 }
  0x2d   : > { %p129_p3 = pnand %p633_p1, %p632_p0 }
  0x2e   : > { %s563_s25 = sand.u32 (!%p129_p3), 1, %s428_s10  }
  0x2f   : > { %132 = sbr.rel (%p129_p3) target bundleno = 193 (0xc1), region = 28  ;;  %s283_s26 = sshll.u32 (!%p129_p3), %s563_s25, 3 }
  0x30   : > { %s135_s27 = scalar_lea.sflag (!%p129_p3), [#allocation3], %s563_s25  ;;  %s138_s29 = scalar_lea.vmem (!%p129_p3), [#allocation2], %s283_s26 }
  0x36   : > { %415 = dma.done.wait (%p501_p6), %s135_s27, 128  }
  0x37   : > { %417 = vsyncadd (%p501_p6), %s135_s27, 4294967168  ;;  %v159_v0 = vld [vmem:[%s138_s29] sm:$0xff]  ;;  %s439_s28 = smov 32   ;;  %s440_s30 = smov 96   ;;  %v178_v1 = vlaneseq  ;;  %vm171_vm0 = vcmask 261120   ;;  %vm173_vm1 = vcmask 523264  }
  0x38   : > { %162 = vrot.lane.b32.xlu0 %v159_v0, %s439_s28  ;;  %168 = vrot.lane.b32.xlu1 %v159_v0, %s440_s30  ;;  %s441_s3 = smov 64   ;;  %s284_s4 = sshll.u32 %s563_s25, 4  ;;  %v160_v6 = vld [vmem:[%s624_s1] sm:$0x3]  ;;  %vm175_vm2 = vcmask 785408  }
  0x39   : > { %v179_v2 = vshrl.u32 %v178_v1, 7  ;;  %s290_s20 = sshll.u32 %s479_s13, 8  ;;  %s158_s7 = scalar_lea.vmem [#allocation5], %s284_s4 }
  0x3a   : > { %s207_s8 = sshll.u32 %s158_s7, 4  ;;  %s579_s17 = scalar_lea.hbm %s625_s2, %s290_s20  ;;  %s581_s8 = int_to_ptr.vmem [resolvable:$true] %s207_s8 }
  0x3b   : > { %v180_v3 = vsub.s32 0, %v179_v2  ;;  %v184_v4 = vsub.s32 1, %v179_v2  ;;  %s193_s19 = scalar_lea.sflag [#allocation4], %s563_s25  ;;  %s370_s13 = scalar_lea.vmem %s581_s8, 256 }
  0x3c   : > { %165 = vrot.lane.b32.xlu0 %v159_v0, %s441_s3  ;;  %p371_p6 = scmp.ne.s32.totalorder %s581_s8, %s370_s13  ;;  %p634_p11 = scmp.ne.s32.totalorder %s629_s21, 0 }
  0x3d   : > { %v181_v7 = vrot.slane %v160_v6, %v180_v3  ;;  %v185_v8 = vrot.slane %v160_v6, %v184_v4  ;;  %s442_s23 = smov [#allocation5]  }
  0x3e   : > { %p372_p12 = pnand %p371_p6, %p634_p11  ;;  %s374_s24 = sshll.u32 %s442_s23, 4  ;;  %s375_s24 = int_to_ptr.vmem [resolvable:$false] %s374_s24 }
  0x3f   : > { %s376_s26 = scalar_lea.vmem %s375_s24, 512  ;;  %p377_p7 = scmp.lt.s32.totalorder %s581_s8, %s375_s24 }
  0x40   : > { %p373_p13 = pneg %p372_p12  ;;  %p378_p10 = scmp.lt.s32.totalorder %s376_s26, %s370_s13 }
  0x42   : > { %p379_p2 = por %p378_p10, %p377_p7 }
  0x44   : > { %p380_p4 = pnand %p379_p2, %p373_p13 }
  0xaa   : > { %v163_v5 = vpop.permute.xlu0 %162  ;;  %v169_v9 = vpop.permute.xlu1 %168 }
  0xab   : > { %v172_v10 = vsel %vm171_vm0, %v159_v0, %v163_v5 }
  0xae   : > { %v166_v11 = vpop.permute.xlu0 %165 }
  0xaf   : > { %v174_v12 = vsel %vm173_vm1, %v172_v10, %v166_v11 }
  0xb0   : > { %v176_v13 = vsel %vm175_vm2, %v174_v12, %v169_v9 }
  0xb1   : > { %v188_v14 = vmul.f32 %v181_v7, %v176_v13  ;;  %v189_v15 = vmul.f32 %v185_v8, %v176_v13 }
  0xb3   : > { %190 = vst [vmem:[%s158_s7] sm:$0xff] %v188_v14  ;;  %191 = vst [vmem:[%s158_s7 + $0x8] sm:$0xff] %v189_v15 }
  0xb4   : > { %383 = shalt.err (!%p380_p4)
}
  0xb5   : > { %s384_s25 = scalar_lea.hbm %s579_s17, 256  ;;  %s388_s28 = scalar_lea.hbm %s625_s2, 512 }
  0xb6   : > { %p385_p5 = scmp.ne.s32.totalorder %s579_s17, %s384_s25  ;;  %p389_p0 = scmp.lt.u32.totalorder %s579_s17, %s625_s2 }
  0xb7   : > { %p390_p1 = scmp.lt.u32.totalorder %s388_s28, %s384_s25  ;;  %p392_p6 = scmp.lt.u32.totalorder %s384_s25, %s579_s17 }
  0xb8   : > { %p386_p8 = pnand %p385_p5, %p634_p11 }
  0xb9   : > { %p391_p3 = por %p390_p1, %p389_p0 }
  0xba   : > { %p387_p9 = pneg %p386_p8 }
  0xbb   : > { %p393_p12 = por %p392_p6, %p391_p3 }
  0xbd   : > { %p394_p13 = pnand %p393_p12, %p387_p9 }
  0xbf   : > { %397 = shalt.err (!%p394_p13)
}
  0xc0   : > { %293 = dma.vmem_to_hbm [thread:$0]  (%p634_p11), %s581_s8, 256, %s579_s17, %s193_s19  }
  0xc1 PF: > { %s219_s4 = sand.u32 1, %s424_s9   ;;  %p635_p7 = scmp.ne.s32.totalorder %s630_s22, 0 }
  0xc2   : > { %p636_p10 = scmp.ge.s32.totalorder %s436_s12, 2  ;;  %s220_s5 = scalar_lea.sflag [#allocation4], %s219_s4 }
  0xc4   : > { %p300_p2 = pnand %p636_p10, %p635_p7 }
  0xc6   : > { %419 = dma.done.wait (!%p300_p2), %s220_s5, 256  }
  0xc7   : > { %421 = vsyncadd (!%p300_p2), %s220_s5, 4294967040  ;;  %p15_p4 = scmp.ge.s32.totalorder %s483_s15, 4   ;;  %s637_s9 = smov %s428_s10 }
  0xc8   : > { %s638_s10 = smov %s432_s11  ;;  %s639_s11 = smov %s495_s18 }
  0xc9   : > { %s640_s12 = smov %s483_s15  ;;  %17 = sbr.rel (!%p15_p4) target bundleno = 5 (0x5), region = 73 }
  0xd0   :  { %225 = vsyncpa [#allocation3], 1 }
  0xd1   :  { %227 = vsyncpa [#allocation3 + $0x1], 1 }
  0xd2   :  { %228 = vsyncpa [#allocation4], 1 }
  0xd3   :  { %230 = vsyncpa [#allocation4 + $0x1], 1 }

</bundles_post_ra>
